<compile_context>
chip_gen: v6e
topology: v6e:2x2x1
jax: 0.10.0
libtpu: 0.0.40
codegen_flags: <defaults>
</compile_context>

<pallas_src>
import functools
import math

import numpy as np
import jax
import jax.numpy as jnp
from jax.experimental import pallas as pl
from jax.experimental.pallas import tpu as pltpu


def _conv1d_same_kernel(x_ref, halo_ref, w_ref, b_ref, o_ref, *,
                        kernel_size, stride, c_in, tl, depthwise):
    """One (batch element, L_out tile) per grid step, channel-major layout.

    x_ref:    (SC, XW)        decimated input tile, SC = stride*C_in, rows = r*C_in + c
    halo_ref: (1, SC, HP)     first HP decimated columns of the NEXT tile
    w_ref:    (NQ, C_out, SC) block-diagonal weights  (depthwise: (K, C_out, 1), f32)
    b_ref:    (C_out, 1)      bias (f32)
    o_ref:    (C_out, TL)     output tile (f32), written lane-dense
    """
    # Append the halo columns once; every tap window is then a plain static lane slice.
    xt = jnp.concatenate([x_ref[...], halo_ref[0]], axis=-1)      # (SC, XW + HP)
    c_out = o_ref.shape[0]
    acc = jnp.zeros((c_out, tl), jnp.float32)

    if depthwise:
        # VPU broadcast-MAC: Cg == 1 matmuls would be pure MXU fill/drain latency.
        for k in range(kernel_size):
            q, r = divmod(k, stride)
            xk = xt[r * c_in:(r + 1) * c_in, q:q + tl].astype(jnp.float32)
            acc = acc + w_ref[k] * xk                              # (C_out,1)*(C_in,TL)
    else:
        # All taps with the same decimated offset q share one dot with contraction SC.
        n_q = (kernel_size - 1) // stride + 1
        for q in range(n_q):
            acc = acc + jnp.dot(w_ref[q], xt[:, q:q + tl],
                                preferred_element_type=jnp.float32)

    o_ref[...] = (acc + b_ref[...]).astype(o_ref.dtype)


@functools.partial(jax.jit,
                   static_argnames=("stride", "groups", "tile_l", "compute_dtype"))
def conv1d_pad_same(x, weight, bias, *, stride, groups, tile_l=1024,
                    compute_dtype=jnp.bfloat16):
    """Forward pass of MyConv1dPadSame.

    x:      (N, C_in, L)             (PyTorch NCL layout)
    weight: (C_out, C_in//groups, K)
    bias:   (C_out,)
    returns (N, C_out, L_out) float32, L_out = ceil(L / stride)
    """
    N, C_in, L = x.shape
    C_out, Cg, K = weight.shape
    assert C_in == Cg * groups and C_out % groups == 0

    # SAME padding (exactly the PyTorch module's math).
    L_out = (L + stride - 1) // stride
    p = max(0, (L_out - 1) * stride + K - L)
    pad_left = p // 2

    q_max = (K - 1) // stride          # halo depth in decimated rows
    n_q = q_max + 1
    Hp = max(q_max, 1)
    SC = stride * C_in
    depthwise = (groups == C_in) and (C_out == C_in)
    bx = jnp.dtype(compute_dtype).itemsize

    # ---- L_out tile selection from a v7x-safe VMEM budget ----------------------------
    def vmem_est(tl, xw):
        blocks = (2 * SC * xw * bx                    # x tile (double-buffered)
                  + 2 * SC * Hp * bx                  # halo
                  + 2 * n_q * C_out * SC * bx         # weights (resident, upper bound)
                  + 2 * C_out * 4                     # bias
                  + 2 * C_out * tl * 4)               # output tile
        temps = (SC * (xw + Hp) * bx                  # concatenated xt
                 + 2 * SC * tl * bx                   # tap windows in flight
                 + 2 * C_out * tl * 4)                # f32 accumulator + store temp
        return blocks + temps

    BLOCK_BUDGET = 24 * 2 ** 20
    tile_cap = max(128, (tile_l // 128) * 128)
    single_tile = (L_out <= tile_cap) and (vmem_est(L_out, L_out + Hp) <= BLOCK_BUDGET)
    if single_tile:
        TLB, num_lt = L_out, 1
        XW = L_out + Hp                 # x block == full decimated width (incl. halo)
    else:
        TLB = tile_cap
        while TLB > 128 and vmem_est(TLB, TLB) > BLOCK_BUDGET:
            TLB -= 128                  # keep a multiple of 128 -> lane-dense stores
        num_lt = -(-L_out // TLB)
        XW = TLB
    Lq_total = num_lt * TLB + Hp
    L_ext = Lq_total * stride

    # ---- input: SAME pad + stride decimation into a channel-major layout --------------
    # x_cl[n, r*C_in + c, m] = xpad[n, c, m*stride + r]; for stride == 1 it is just a pad.
    x_ext = jnp.pad(x, ((0, 0), (0, 0), (pad_left, L_ext - L - pad_left)))
    x_ext = x_ext.astype(compute_dtype)
    if stride == 1:
        x_cl = x_ext                                               # (N, C_in, Lq_total)
    else:
        x_cl = (x_ext.reshape(N, C_in, Lq_total, stride)
                      .transpose(0, 3, 1, 2)
                      .reshape(N, SC, Lq_total))
    # Halo side array: decimated columns [(t+1)*TLB, (t+1)*TLB + Hp) for each tile t.
    halo_cols = (jnp.arange(num_lt)[:, None] + 1) * TLB + jnp.arange(Hp)[None, :]
    x_halo = jnp.transpose(x_cl[:, :, halo_cols], (0, 2, 1, 3))    # (N, num_lt, SC, Hp)

    # ---- weights -----------------------------------------------------------------------
    if depthwise:
        w_arr = jnp.transpose(weight, (2, 0, 1)).astype(jnp.float32)       # (K, C_out, 1)
    else:
        # Block-diagonal expansion over groups, then regroup taps by decimated offset q:
        # w_arr[q, co, r*C_in + c] = w_blockdiag[co, c, q*stride + r]  (zero for k >= K).
        co_g = C_out // groups
        g_co = jnp.arange(C_out) // co_g
        g_ci = jnp.arange(C_in) // Cg
        mask = (g_co[:, None] == g_ci[None, :]).astype(weight.dtype)       # (C_out, C_in)
        w_bd = weight[:, jnp.arange(C_in) % Cg, :] * mask[:, :, None]      # (C_out, C_in, K)
        w_bd = jnp.pad(w_bd, ((0, 0), (0, 0), (0, n_q * stride - K)))
        w_arr = (w_bd.reshape(C_out, C_in, n_q, stride)
                      .transpose(2, 0, 3, 1)                               # (NQ, C_out, s, C_in)
                      .reshape(n_q, C_out, SC)
                      .astype(compute_dtype))
    b_arr = bias.reshape(C_out, 1).astype(jnp.float32)

    kernel = functools.partial(
        _conv1d_same_kernel,
        kernel_size=K, stride=stride, c_in=C_in, tl=TLB, depthwise=depthwise)

    flops = 2 * N * L_out * C_out * K * (1 if depthwise else C_in)
    bytes_accessed = int(x_cl.size * bx + x_halo.size * bx
                         + w_arr.size * w_arr.dtype.itemsize
                         + N * C_out * L_out * 4)
    cost = pl.CostEstimate(flops=flops, transcendentals=0,
                           bytes_accessed=bytes_accessed)

    est = vmem_est(TLB, XW)
    vmem_limit = int(min(max(2 * est, 32 * 2 ** 20), 48 * 2 ** 20))

    out = pl.pallas_call(
        kernel,
        out_shape=jax.ShapeDtypeStruct((N, C_out, L_out), jnp.float32),
        grid=(N, num_lt),
        in_specs=[
            pl.BlockSpec((None, SC, XW), lambda n, t: (n, 0, t)),          # x tile
            pl.BlockSpec((None, 1, SC, Hp), lambda n, t: (n, t, 0, 0)),    # halo
            pl.BlockSpec(w_arr.shape, lambda n, t: (0, 0, 0)),             # weights (resident)
            pl.BlockSpec((C_out, 1), lambda n, t: (0, 0)),                 # bias (resident)
        ],
        out_specs=pl.BlockSpec((None, C_out, TLB), lambda n, t: (n, 0, t)),
        compiler_params=pltpu.CompilerParams(
            dimension_semantics=("parallel", "parallel"),
            vmem_limit_bytes=vmem_limit),
        cost_estimate=cost,
    )(x_cl, x_halo, w_arr, b_arr)
    return out


def _reference_conv1d_pad_same(x, weight, bias, *, stride, groups):
    """Pure-JAX reference (lax conv) with identical padding math."""
    N, C_in, L = x.shape
    C_out, Cg, K = weight.shape
    out_dim = (L + stride - 1) // stride
    p = max(0, (out_dim - 1) * stride + K - L)
    pad_left = p // 2
    pad_right = p - pad_left
    x_pad = jnp.pad(x, ((0, 0), (0, 0), (pad_left, pad_right)))
    y = jax.lax.conv_general_dilated(
        x_pad, weight,
        window_strides=(stride,),
        padding=[(0, 0)],
        dimension_numbers=("NCH", "OIH", "NCH"),
        feature_group_count=groups,
    )
    return y + bias[None, :, None]


def _run_case(key, *, N, C_in, L, C_out, K, stride, groups, tile_l=1024,
              compute_dtype=jnp.float32, rtol=1e-4, atol=1e-4):
    kx, kw, kb = jax.random.split(key, 3)
    x = jax.random.normal(kx, (N, C_in, L), dtype=jnp.float32)
    fan_in = (C_in // groups) * K
    bound = 1.0 / math.sqrt(fan_in)
    weight = jax.random.uniform(kw, (C_out, C_in // groups, K),
                                dtype=jnp.float32, minval=-bound, maxval=bound)
    bias = jax.random.uniform(kb, (C_out,),
                              dtype=jnp.float32, minval=-bound, maxval=bound)

    out = conv1d_pad_same(x, weight, bias, stride=stride, groups=groups,
                          tile_l=tile_l, compute_dtype=compute_dtype)
    out = jax.block_until_ready(out)

    ref = _reference_conv1d_pad_same(x, weight, bias, stride=stride, groups=groups)
    ref = jax.block_until_ready(ref)

    assert out.shape == ref.shape, (out.shape, ref.shape)
    np.testing.assert_allclose(np.asarray(out), np.asarray(ref), rtol=rtol, atol=atol)


if __name__ == "__main__":
    key = jax.random.PRNGKey(0)
    k1, k2, k3, k4 = jax.random.split(key, 4)

    # A: grouped + strided, single output tile, f32 path (tight tolerance).
    _run_case(k1, N=2, C_in=4, L=16, C_out=8, K=3, stride=2, groups=2,
              compute_dtype=jnp.float32)

    # B: stride=1 (pad-only input prep), multiple 128-wide L tiles with halo, f32.
    _run_case(k2, N=2, C_in=8, L=384, C_out=16, K=5, stride=1, groups=1,
              tile_l=128, compute_dtype=jnp.float32)

    # C: bf16 MXU path, grouped + strided, partial last L tile (masked store).
    _run_case(k3, N=2, C_in=16, L=300, C_out=32, K=16, stride=2, groups=4,
              tile_l=128, compute_dtype=jnp.bfloat16, rtol=3e-2, atol=3e-2)

    # D: depthwise (groups == C_in == C_out) VPU broadcast-MAC path with stride.
    _run_case(k4, N=2, C_in=6, L=40, C_out=6, K=7, stride=4, groups=6,
              compute_dtype=jnp.float32)

    print("KERNEL_OK")
</pallas_src>

<mosaic_0001>
module attributes {stable_mosaic.version = 11 : i64} {
  func.func @_conv1d_same_kernel(%arg0: i32, %arg1: i32, %arg2: memref<1x8x9xf32, #tpu.memory_space<vmem>>, %arg3: memref<1x1x8x1xf32, #tpu.memory_space<vmem>>, %arg4: memref<2x8x8xf32, #tpu.memory_space<vmem>>, %arg5: memref<8x1xf32, #tpu.memory_space<vmem>>, %arg6: memref<1x8x8xf32, #tpu.memory_space<vmem>>) attributes {dimension_semantics = [#tpu.dimension_semantics<parallel>, #tpu.dimension_semantics<parallel>], iteration_bounds = array<i64: 2, 1>, scalar_prefetch = 0 : i64, scratch_operands = 0 : i64, tpu.core_type = #tpu.core_type<tc>, window_params = [{transform_indices = @transform_0, window_bounds = array<i64: 1, 8, 9>}, {transform_indices = @transform_1, window_bounds = array<i64: 1, 1, 8, 1>}, {pipeline_mode = #tpu.pipeline_mode<synchronous>, transform_indices = @transform_2, window_bounds = array<i64: 2, 8, 8>}, {pipeline_mode = #tpu.pipeline_mode<synchronous>, transform_indices = @transform_3, window_bounds = array<i64: 8, 1>}, {transform_indices = @transform_4, window_bounds = array<i64: 1, 8, 8>}]} {
    %c0 = arith.constant 0 : index
    %c0_0 = arith.constant 0 : index
    %c0_1 = arith.constant 0 : index
    %0 = vector.load %arg2[%c0, %c0_0, %c0_1] : memref<1x8x9xf32, #tpu.memory_space<vmem>>, vector<1x8x9xf32>
    %1 = vector.shape_cast %0 : vector<1x8x9xf32> to vector<8x9xf32>
    %c0_2 = arith.constant 0 : index
    %c0_3 = arith.constant 0 : index
    %c0_4 = arith.constant 0 : index
    %c0_5 = arith.constant 0 : index
    %2 = vector.load %arg3[%c0_2, %c0_3, %c0_4, %c0_5] : memref<1x1x8x1xf32, #tpu.memory_space<vmem>>, vector<1x1x8x1xf32>
    %3 = vector.shape_cast %2 : vector<1x1x8x1xf32> to vector<8x1xf32>
    %4 = tpu.concatenate %1, %3 in 1 : vector<8x9xf32>, vector<8x1xf32> -> vector<8x10xf32>
    %cst = arith.constant 0.000000e+00 : f32
    %5 = vector.broadcast %cst : f32 to vector<8x8xf32>
    %c0_6 = arith.constant 0 : index
    %c0_7 = arith.constant 0 : index
    %c0_8 = arith.constant 0 : index
    %6 = vector.load %arg4[%c0_6, %c0_7, %c0_8] : memref<2x8x8xf32, #tpu.memory_space<vmem>>, vector<1x8x8xf32>
    %7 = vector.shape_cast %6 : vector<1x8x8xf32> to vector<8x8xf32>
    %8 = vector.extract_strided_slice %4 {offsets = [0, 0], sizes = [8, 8], strides = [1, 1]} : vector<8x10xf32> to vector<8x8xf32>
    %cst_9 = arith.constant dense<0.000000e+00> : vector<8x8xf32>
    %9 = tpu.matmul %7, %8, %cst_9 {dimension_numbers = #tpu.dot_dimension_numbers<[1], [0], [0], [1], [0, 0, 1, 1], [], []>} : vector<8x8xf32>, vector<8x8xf32>, vector<8x8xf32> -> vector<8x8xf32>
    %10 = arith.addf %5, %9 : vector<8x8xf32>
    %c1 = arith.constant 1 : index
    %c0_10 = arith.constant 0 : index
    %c0_11 = arith.constant 0 : index
    %11 = vector.load %arg4[%c1, %c0_10, %c0_11] : memref<2x8x8xf32, #tpu.memory_space<vmem>>, vector<1x8x8xf32>
    %12 = vector.shape_cast %11 : vector<1x8x8xf32> to vector<8x8xf32>
    %13 = vector.extract_strided_slice %4 {offsets = [0, 1], sizes = [8, 8], strides = [1, 1]} : vector<8x10xf32> to vector<8x8xf32>
    %cst_12 = arith.constant dense<0.000000e+00> : vector<8x8xf32>
    %14 = tpu.matmul %12, %13, %cst_12 {dimension_numbers = #tpu.dot_dimension_numbers<[1], [0], [0], [1], [0, 0, 1, 1], [], []>} : vector<8x8xf32>, vector<8x8xf32>, vector<8x8xf32> -> vector<8x8xf32>
    %15 = arith.addf %10, %14 : vector<8x8xf32>
    %c0_13 = arith.constant 0 : index
    %c0_14 = arith.constant 0 : index
    %16 = vector.load %arg5[%c0_13, %c0_14] : memref<8x1xf32, #tpu.memory_space<vmem>>, vector<8x1xf32>
    %17 = vector.broadcast %16 : vector<8x1xf32> to vector<8x8xf32>
    %18 = arith.addf %15, %17 : vector<8x8xf32>
    %c0_15 = arith.constant 0 : index
    %c0_16 = arith.constant 0 : index
    %c0_17 = arith.constant 0 : index
    %19 = vector.load %arg6[%c0_15, %c0_16, %c0_17] : memref<1x8x8xf32, #tpu.memory_space<vmem>>, vector<1x8x8xf32>
    %20 = vector.shape_cast %19 : vector<1x8x8xf32> to vector<8x8xf32>
    %21 = vector.shape_cast %18 : vector<8x8xf32> to vector<1x8x8xf32>
    tpu.vector_store %arg6[%c0_15, %c0_16, %c0_17], %21 {strides = array<i32>} : memref<1x8x8xf32, #tpu.memory_space<vmem>>, vector<1x8x8xf32>,
    return
  }
  func.func @transform_0(%arg0: i32, %arg1: i32) -> (i32, i32, i32) {
    %c0_i32 = arith.constant 0 : i32
    %c0_i32_0 = arith.constant 0 : i32
    return %arg0, %c0_i32, %arg1 : i32, i32, i32
  }
  func.func @transform_1(%arg0: i32, %arg1: i32) -> (i32, i32, i32, i32) {
    %c0_i32 = arith.constant 0 : i32
    %c0_i32_0 = arith.constant 0 : i32
    %c0_i32_1 = arith.constant 0 : i32
    return %arg0, %arg1, %c0_i32, %c0_i32_0 : i32, i32, i32, i32
  }
  func.func @transform_2(%arg0: i32, %arg1: i32) -> (i32, i32, i32) {
    %c0_i32 = arith.constant 0 : i32
    %c0_i32_0 = arith.constant 0 : i32
    %c0_i32_1 = arith.constant 0 : i32
    %c0_i32_2 = arith.constant 0 : i32
    return %c0_i32, %c0_i32_0, %c0_i32_1 : i32, i32, i32
  }
  func.func @transform_3(%arg0: i32, %arg1: i32) -> (i32, i32) {
    %c0_i32 = arith.constant 0 : i32
    %c0_i32_0 = arith.constant 0 : i32
    %c0_i32_1 = arith.constant 0 : i32
    return %c0_i32, %c0_i32_0 : i32, i32
  }
  func.func @transform_4(%arg0: i32, %arg1: i32) -> (i32, i32, i32) {
    %c0_i32 = arith.constant 0 : i32
    %c0_i32_0 = arith.constant 0 : i32
    return %arg0, %c0_i32, %arg1 : i32, i32, i32
  }
}

</mosaic_0001>

<bundles_post_ra>
// kernel: conv1d_pad_same.1
= control target key start
LH: loop header
LB: loop body
LE: loop exit
PB: predicated region body
PF: predicated region fallthrough
CT: control target
= control target key end

     0   :  { %9 = vsyncpa [#allocation3], 0  ;;  %s831_s0 = inlined_call_operand.vmem [shape: f32[2,8,9], index: 0, kind: input, shape index: {}]   ;;  %s832_s1 = inlined_call_operand.vmem [shape: f32[2,1,8,1], index: 1, kind: input, shape index: {}]   ;;  %s833_s2 = inlined_call_operand.vmem [shape: f32[2,8,8], index: 2, kind: input, shape index: {}]   ;;  %s834_s3 = inlined_call_operand.vmem [shape: f32[8,1], index: 3, kind: input, shape index: {}]   ;;  %s835_s4 = inlined_call_operand.hbm [shape: f32[2,8,8], index: 4, kind: output, shape index: {}]  }
   0x1   :  { %11 = vsyncpa [#allocation3 + $0x1], 0  ;;  %s717_s15 = smov 0   ;;  %s719_s16 = smov 0  }
   0x2   :  { %s721_s17 = smov 0   ;;  %s723_s18 = smov 0  }
   0x3   :  { %s725_s19 = smov 0   ;;  %s727_s20 = smov 0  }
   0x4 LB: > { %s517_s21 = sadd.s32 4294967295, %s684_s20   ;;  %s518_s22 = sadd.s32 4294967294, %s684_s20   ;;  %s684_s20 = sphi %s727_s20, %s17_s20   ;;  %s680_s19 = sphi %s725_s19, %s842_s19   ;;  %s676_s18 = sphi %s723_s18, %s841_s18   ;;  %s672_s17 = sphi %s721_s17, %s840_s17   ;;  %s668_s16 = sphi %s719_s16, %s839_s16   ;;  %s664_s15 = sphi %s717_s15, %s838_s15  }
   0x5   : > { %s29_s23 = sadd.s32 1, %s680_s19  ;;  %s136_s24 = sadd.s32 1, %s672_s17 }
   0x6   : > { %p31_p0 = scmp.ge.s32.totalorder %s29_s23, 2  ;;  %p146_p1 = scmp.ne.s32.totalorder %s672_s17, %s668_s16 }
   0x7   : > { %p147_p2 = scmp.eq.s32.totalorder %s517_s21, 1  ;;  %p152_p3 = scmp.ne.s32.totalorder %s668_s16, %s664_s15 }
   0x8   : > { %s844_s23 = smov (%p31_p0, %s29_s23), 0  ;;  %p153_p5 = scmp.eq.s32.totalorder %s518_s22, 1 }
   0x9   : > { %p757_p4 = por %p147_p2, %p146_p1  ;;  %s131_s26 = ssub.s32 %s680_s19, %s844_s23 }
   0xa   : > { %p521_p6 = scmp.ge.s32.totalorder %s684_s20, 1  ;;  %p134_p7 = scmp.eq.s32.totalorder %s131_s26, 0 }
   0xb   : > { %p764_p8 = por %p153_p5, %p152_p3  ;;  %p197_p9 = scmp.lt.s32.totalorder %s684_s20, 3 }
   0xc   : > { %s770_s28 = scalar_select %p134_p7, %s672_s17, %s136_s24  }
   0xd   : > { %p198_p10 = pnand %p521_p6, %p197_p9 }
   0xe   : > { %p232_p11 = scmp.lt.s32.totalorder (!%p198_p10), %s676_s18, 1  ;;  %s688_s8 = smov (!%p198_p10), 9  }
   0xf   : > { %201 = sbr.rel (%p198_p10) target bundleno = 467 (0x1d3), region = 36  ;;  %s690_s22 = smov (!%p198_p10), 127  }
  0x10   : > { %s529_s5 = sshll.u32 (!%p198_p10), %s676_s18, 7 }
  0x11   : > { %s429_s10 = scalar_lea.hbm (!%p198_p10), %s835_s4, %s529_s5 }
  0x14   : > { %v686_v0 = vmov 0.0   ;;  %vm687_vm0 = vmmov 0   ;;  %s233_s29 = scalar_select %p232_p11, %s676_s18, 1  ;;  %v408_v2 = vld [vmem:[%s834_s3] sm:$0xff]  ;;  %v689_v3 = vmov 0   ;;  %vm252_vm1 = vcmask 72704  }
  0x15   : > { %541 = vmatprep.subr.mxu1 %v686_v0  ;;  %543 = vmatprep.mubr.msk.f32.mxu1 %vm687_vm0, %v686_v0  ;;  %v254_v6 = vld [vmem:[%s833_s2] sm:$0xff]  ;;  %vm261_vm2 = vcmask 64512   ;;  %v525_v8 = vld [vmem:[%s833_s2 + $0x8] sm:$0xff] }
  0x16   : > { %536 = vmatprep.subr.mxu0 %v686_v0  ;;  %538 = vmatprep.mubr.msk.f32.mxu0 %vm687_vm0, %v686_v0  ;;  %s523_s30 = sshll.u32 %s233_s29, 3  ;;  %s229_s29 = sand.u32 1, %s668_s16  }
  0x17   : > { %s245_s7 = scalar_lea.vmem %s832_s1, %s523_s30  ;;  %606 = vset.pattern.permute.xlu1 %v689_v3  ;;  %607 = vset.pattern.permute.xlu0 %v689_v3  ;;  %s238_s13 = scalar_lea.vmem %s831_s0, %s523_s30 }
  0x18   : > { %v247_v1 = vld [vmem:[%s245_s7] sm:$0xff]  ;;  %411 = vperm.xlu1 %606, %v408_v2   ;;  %s522_s30 = sshll.u32 %s229_s29, 3  ;;  %s417_s11 = scalar_lea.sflag [#allocation3], %s229_s29 }
  0x19   : > { %249 = vrot.lane.b32.xlu0 %v247_v1, %s688_s8  ;;  %v246_v4 = vld [vmem:[%s238_s13] sm:$0xff]  ;;  %s231_s6 = scalar_lea.vmem [#allocation2], %s522_s30  ;;  %s691_s13 = smov [#allocation2]  }
  0x1a   : > { %s431_s7 = sshll.u32 %s231_s6, 4  ;;  %s612_s18 = sshll.u32 %s691_s13, 4  ;;  %s432_s7 = int_to_ptr.vmem [resolvable:$true] %s431_s7  ;;  %s613_s18 = int_to_ptr.vmem [resolvable:$false] %s612_s18 }
  0x1b   : > { %s608_s12 = scalar_lea.vmem %s432_s7, 128  ;;  %s614_s14 = scalar_lea.vmem %s613_s18, 256 }
  0x1c   : > { %p609_p12 = scmp.ne.s32.totalorder %s432_s7, %s608_s12  ;;  %p615_p1 = scmp.lt.s32.totalorder %s432_s7, %s613_s18 }
  0x1d   : > { %p616_p2 = scmp.lt.s32.totalorder %s614_s14, %s608_s12 }
  0x1e   : > { %p610_p13 = pnand %p609_p12, %p757_p4 }
  0x1f   : > { %p617_p3 = por %p616_p2, %p615_p1 }
  0x20   : > { %p611_p0 = pneg %p610_p13 }
  0x22   : > { %p618_p5 = pnand %p617_p3, %p611_p0 }
  0x8b   : > { %v250_v5 = vpop.permute.xlu0 %249 }
  0x8c   : > { %v253_v7 = vsel %vm252_vm1, %v246_v4, %v250_v5 }
  0x8d   : > { %258 = vrot.lane.b32.xlu0 %v253_v7, %s690_s22  ;;  %542 = vmatpush3.msra.mxu1 %v253_v7 }
  0x8e   : > { %544 = vmatmul.mubr.msk.f32.vlgmr.msra.gmra.mxu1 %vm261_vm2, %v254_v6 }
  0x93   : > { %v412_v13 = vpop.permute.xlu1 %411 }
  0xff   : > { %v259_v9 = vpop.permute.xlu0 %258 }
 0x100   : > { %537 = vmatpush3.msra.mxu0 %v259_v9 }
 0x101   : > { %539 = vmatmul.mubr.msk.f32.vlgmr.msra.gmra.mxu0 %vm261_vm2, %v525_v8 }
 0x14e   : > { %v404_v10 = vpop.f32.mrf.mxu1 }
 0x150   : > { %v545_v11 = vpop.f32.mrf.mxu1 }
 0x1c1   : > { %v331_v12 = vpop.f32.mrf.mxu0 }
 0x1c2   : > { %v405_v14 = vadd.f32 %v404_v10, %v331_v12 }
 0x1c3   : > { %v540_v15 = vpop.f32.mrf.mxu0 }
 0x1c4   : > { %v414_v16 = vadd.f32 %v412_v13, %v405_v14 }
 0x1c6   : > { %415 = vst.msk [vmem:[%s231_s6] sm:$0xff] %vm261_vm2, %v414_v16 }
 0x1c7   : > { %621 = shalt.err (!%p618_p5)
}
 0x1c8   : > { %s622_s21 = scalar_lea.hbm %s429_s10, 128  ;;  %s626_s26 = scalar_lea.hbm %s835_s4, 256 }
 0x1c9   : > { %p623_p6 = scmp.ne.s32.totalorder %s429_s10, %s622_s21  ;;  %p627_p10 = scmp.lt.s32.totalorder %s429_s10, %s835_s4 }
 0x1ca   : > { %p628_p11 = scmp.lt.s32.totalorder %s626_s26, %s622_s21 }
 0x1cb   : > { %p624_p7 = pnand %p623_p6, %p757_p4 }
 0x1cc   : > { %p629_p12 = por %p628_p11, %p627_p10 }
 0x1cd   : > { %p625_p9 = pneg %p624_p7 }
 0x1cf   : > { %p630_p13 = pnand %p629_p12, %p625_p9 }
 0x1d1   : > { %633 = shalt.err (!%p630_p13)
}
 0x1d2   : > { %546 = dma.vmem_to_hbm [thread:$0]  (%p757_p4), %s432_s7, 128, %s429_s10, %s417_s11  }
 0x1d3 PF: > { %p552_p0 = scmp.ge.s32.totalorder %s684_s20, 2  ;;  %s443_s5 = sand.u32 1, %s664_s15  }
 0x1d4   : > { %s444_s6 = scalar_lea.sflag [#allocation3], %s443_s5 }
 0x1d5   : > { %p549_p1 = pnand %p552_p0, %p764_p8 }
 0x1d7   : > { %p550_p2 = pneg %p549_p1 }
 0x1d9   : > { %659 = dma.done.wait (%p550_p2), %s444_s6, 128  }
 0x1da   : > { %661 = vsyncadd (%p550_p2), %s444_s6, 4294967168  ;;  %s17_s20 = sadd.s32 1, %s684_s20   ;;  %s838_s15 = smov %s668_s16 }
 0x1db   : > { %p14_p3 = scmp.ge.s32.totalorder %s17_s20, 4   ;;  %s839_s16 = smov %s672_s17 }
 0x1dc   : > { %s840_s17 = smov %s770_s28  ;;  %s841_s18 = smov %s680_s19 }
 0x1dd   : > { %s842_s19 = smov %s844_s23  ;;  %16 = sbr.rel (!%p14_p3) target bundleno = 4 (0x4), region = 75 }
 0x1e2   :  { %449 = vsyncpa [#allocation3], 1 }
 0x1e3   :  { %451 = vsyncpa [#allocation3 + $0x1], 1 }

</bundles_post_ra>
